<compile_context>
chip_gen: v6e
topology: v6e:2x2x1
jax: 0.10.0
libtpu: 0.0.40
codegen_flags: <defaults>
</compile_context>

<pallas_src>
import jax
import jax.numpy as jnp
from jax.experimental import pallas as pl
from jax.experimental.pallas import tpu as pltpu

D_MODEL = 32          # d_model for this synthetic instance
DOWN_SIZE = 64        # fixed by the module
ADAPTER_SCALE = 0.1   # adapter_scalar
LN_EPS = 1e-5         # nn.LayerNorm default


def _round_up(n, m):
    return ((n + m - 1) // m) * m


def _block_diag(w, p):
    """(a, b) -> (p*a, p*b) block-diagonal with p copies of w on the diagonal."""
    a, b = w.shape
    eye = jnp.eye(p, dtype=w.dtype)
    return (eye[:, None, :, None] * w[None, :, None, :]).reshape(p * a, p * b)


def adapter_kernel(x_ref, avg_ref, wd_ref, bd_ref, wu_ref, bu_ref, o_ref):
    # x block: (rt, P*D) with P logical rows packed along the 128-lane axis.
    x = x_ref[...].astype(jnp.float32)

    # Per-32-lane-group LayerNorm stats via a block-diagonal averaging matmul;
    # the matmul both reduces within each group and broadcasts the result back
    # to every lane of that group (no XLU segmented reduce, no masked lanes).
    mean = jnp.dot(x, avg_ref[...], preferred_element_type=jnp.float32)
    centered = x - mean
    var = jnp.dot(centered * centered, avg_ref[...],
                  preferred_element_type=jnp.float32)
    xn = centered * jax.lax.rsqrt(var + LN_EPS)
    # gamma/beta are pre-folded into (wd, bd); adapter scale into (wu, bu).

    # down_proj + ReLU (block-diagonal folded weights)
    down = jnp.dot(xn, wd_ref[...], preferred_element_type=jnp.float32) + bd_ref[...]
    down = jnp.maximum(down, 0.0)

    # TODO(synk): dropout is identity in eval mode (training=False); not applied.

    # up_proj (adapter scale pre-folded)
    up = jnp.dot(down, wu_ref[...], preferred_element_type=jnp.float32) + bu_ref[...]
    o_ref[...] = up.astype(o_ref.dtype)


def adapter_forward(x, params, *, row_tile=8192):
    """x: (B, S, D) -> (B, S, D)."""
    B, S, D = x.shape
    assert D == D_MODEL
    N = B * S

    # Lane packing factor: pack P logical rows (P*D lanes) per 128-lane row.
    # P=4 gives a fully dense 128-lane layout; fall back to 2/1 if N is odd.
    P = 4 if N % 4 == 0 else (2 if N % 2 == 0 else 1)
    LD, LH = P * D, P * DOWN_SIZE
    M = N // P
    x2 = x.reshape(M, LD)   # contiguous row-major => free reshape, no data movement

    # Fold constants once (eval mode, dropout identity => exact rewrite):
    #   LN affine into down_proj:   wd' = gamma[:,None]*wd ; bd' = bd + beta@wd
    #   adapter scale into up_proj: wu' = wu*s ; bu' = bu*s
    # then replicate block-diagonally for the packed layout.
    f32 = jnp.float32
    gamma = params["ln_gamma"].astype(f32)
    beta = params["ln_beta"].astype(f32)
    wd_f = gamma[:, None] * params["down_w"].astype(f32)                    # (D, H)
    bd_f = params["down_b"].astype(f32) + beta @ params["down_w"].astype(f32)
    wu_f = params["up_w"].astype(f32) * ADAPTER_SCALE                        # (H, D)
    bu_f = params["up_b"].astype(f32) * ADAPTER_SCALE

    avg = _block_diag(jnp.full((D, D), 1.0 / D, f32), P)   # (LD, LD) group-mean matrix
    wd = _block_diag(wd_f, P)                              # (LD, LH)
    wu = _block_diag(wu_f, P)                              # (LH, LD)
    bd = jnp.tile(bd_f, P).reshape(1, LH)
    bu = jnp.tile(bu_f, P).reshape(1, LD)

    # Row tile (in packed rows): large to amortise per-step pipeline overhead.
    # If everything fits in one tile, use the exact row count (block == full dim,
    # so no (8,128) issue and a single DMA).  Otherwise use an 8-aligned tile and
    # let the last partial block be handled by Pallas (OOB writes masked).
    rt_target = max(8, _round_up(row_tile // P, 8))
    rt = M if M <= rt_target else rt_target
    grid = (pl.cdiv(M, rt),)

    itemsize = jnp.dtype(x.dtype).itemsize
    cost = pl.CostEstimate(
        flops=int(4 * M * LD * LD + 4 * M * LD * LH),
        transcendentals=int(M * LD),
        bytes_accessed=int(2 * N * D * itemsize
                           + 4 * (LD * LD + 2 * LD * LH + LH + LD)),
    )

    out = pl.pallas_call(
        adapter_kernel,
        out_shape=jax.ShapeDtypeStruct((M, LD), x.dtype),
        grid_spec=pltpu.PrefetchScalarGridSpec(
            num_scalar_prefetch=0,
            grid=grid,
            in_specs=[
                pl.BlockSpec((rt, LD), lambda i: (i, 0)),   # x rows (streamed)
                pl.BlockSpec((LD, LD), lambda i: (0, 0)),   # group-avg matrix (resident)
                pl.BlockSpec((LD, LH), lambda i: (0, 0)),   # folded down W (resident)
                pl.BlockSpec((1, LH), lambda i: (0, 0)),    # folded down b (resident)
                pl.BlockSpec((LH, LD), lambda i: (0, 0)),   # folded up W (resident)
                pl.BlockSpec((1, LD), lambda i: (0, 0)),    # folded up b (resident)
            ],
            out_specs=pl.BlockSpec((rt, LD), lambda i: (i, 0)),
        ),
        compiler_params=pltpu.CompilerParams(
            dimension_semantics=("parallel",),
            vmem_limit_bytes=48 * 1024 * 1024),
        cost_estimate=cost,
    )(x2, avg, wd, bd, wu, bu)

    return out.reshape(B, S, D)


def init_params(key, d_model=D_MODEL, down_size=DOWN_SIZE):
    k1, k2, k3, k4 = jax.random.split(key, 4)
    # PyTorch nn.Linear default init: U(-1/sqrt(fan_in), 1/sqrt(fan_in))
    lim_d = 1.0 / (d_model ** 0.5)
    lim_u = 1.0 / (down_size ** 0.5)
    return {
        "ln_gamma": jnp.ones((d_model,), jnp.float32),
        "ln_beta": jnp.zeros((d_model,), jnp.float32),
        "down_w": jax.random.uniform(k1, (d_model, down_size), jnp.float32,
                                     -lim_d, lim_d),
        "down_b": jax.random.uniform(k2, (down_size,), jnp.float32, -lim_d, lim_d),
        "up_w": jax.random.uniform(k3, (down_size, d_model), jnp.float32,
                                   -lim_u, lim_u),
        "up_b": jax.random.uniform(k4, (d_model,), jnp.float32, -lim_u, lim_u),
    }


def adapter_reference(x, params):
    xf = x.astype(jnp.float32)
    mean = jnp.mean(xf, axis=-1, keepdims=True)
    var = jnp.mean((xf - mean) ** 2, axis=-1, keepdims=True)
    xn = (xf - mean) * jax.lax.rsqrt(var + LN_EPS)
    xn = xn * params["ln_gamma"] + params["ln_beta"]
    down = jnp.maximum(xn @ params["down_w"] + params["down_b"], 0.0)
    up = down @ params["up_w"] + params["up_b"]
    return (up * ADAPTER_SCALE).astype(x.dtype)


if __name__ == "__main__":
    key = jax.random.PRNGKey(0)
    kx, kp = jax.random.split(key)

    B, S, D = 2, 16, D_MODEL
    x = jax.random.normal(kx, (B, S, D), jnp.float32)
    params = init_params(kp)

    fwd = jax.jit(adapter_forward)   # folds constant-fold into the same program
    out = fwd(x, params)
    jax.block_until_ready(out)

    ref = adapter_reference(x, params)
    assert out.shape == (B, S, D)
    assert jnp.allclose(out, ref, atol=1e-4, rtol=1e-4)

    print("KERNEL_OK")
</pallas_src>

<mosaic_0001>
module attributes {stable_mosaic.version = 11 : i64} {
  func.func @adapter_kernel(%arg0: i32, %arg1: memref<8x128xf32, #tpu.memory_space<vmem>>, %arg2: memref<128x128xf32, #tpu.memory_space<vmem>>, %arg3: memref<128x256xf32, #tpu.memory_space<vmem>>, %arg4: memref<1x256xf32, #tpu.memory_space<vmem>>, %arg5: memref<256x128xf32, #tpu.memory_space<vmem>>, %arg6: memref<1x128xf32, #tpu.memory_space<vmem>>, %arg7: memref<8x128xf32, #tpu.memory_space<vmem>>) attributes {dimension_semantics = [#tpu.dimension_semantics<parallel>], iteration_bounds = array<i64: 1>, scalar_prefetch = 0 : i64, scratch_operands = 0 : i64, tpu.core_type = #tpu.core_type<tc>, window_params = [{transform_indices = @transform_0, window_bounds = array<i64: 8, 128>}, {pipeline_mode = #tpu.pipeline_mode<synchronous>, transform_indices = @transform_1, window_bounds = array<i64: 128, 128>}, {pipeline_mode = #tpu.pipeline_mode<synchronous>, transform_indices = @transform_2, window_bounds = array<i64: 128, 256>}, {pipeline_mode = #tpu.pipeline_mode<synchronous>, transform_indices = @transform_3, window_bounds = array<i64: 1, 256>}, {pipeline_mode = #tpu.pipeline_mode<synchronous>, transform_indices = @transform_4, window_bounds = array<i64: 256, 128>}, {pipeline_mode = #tpu.pipeline_mode<synchronous>, transform_indices = @transform_5, window_bounds = array<i64: 1, 128>}, {transform_indices = @transform_6, window_bounds = array<i64: 8, 128>}]} {
    %c0 = arith.constant 0 : index
    %c0_0 = arith.constant 0 : index
    %0 = vector.load %arg1[%c0, %c0_0] : memref<8x128xf32, #tpu.memory_space<vmem>>, vector<8x128xf32>
    %c0_1 = arith.constant 0 : index
    %c0_2 = arith.constant 0 : index
    %1 = vector.load %arg2[%c0_1, %c0_2] : memref<128x128xf32, #tpu.memory_space<vmem>>, vector<128x128xf32>
    %cst = arith.constant dense<0.000000e+00> : vector<8x128xf32>
    %2 = tpu.matmul %0, %1, %cst {dimension_numbers = #tpu.dot_dimension_numbers<[1], [0], [0], [1], [0, 0, 1, 1], [], []>} : vector<8x128xf32>, vector<128x128xf32>, vector<8x128xf32> -> vector<8x128xf32>
    %3 = arith.subf %0, %2 : vector<8x128xf32>
    %4 = arith.mulf %3, %3 : vector<8x128xf32>
    %c0_3 = arith.constant 0 : index
    %c0_4 = arith.constant 0 : index
    %5 = vector.load %arg2[%c0_3, %c0_4] : memref<128x128xf32, #tpu.memory_space<vmem>>, vector<128x128xf32>
    %cst_5 = arith.constant dense<0.000000e+00> : vector<8x128xf32>
    %6 = tpu.matmul %4, %5, %cst_5 {dimension_numbers = #tpu.dot_dimension_numbers<[1], [0], [0], [1], [0, 0, 1, 1], [], []>} : vector<8x128xf32>, vector<128x128xf32>, vector<8x128xf32> -> vector<8x128xf32>
    %cst_6 = arith.constant 9.99999974E-6 : f32
    %7 = vector.broadcast %cst_6 : f32 to vector<8x128xf32>
    %8 = arith.addf %6, %7 : vector<8x128xf32>
    %9 = math.rsqrt %8 : vector<8x128xf32>
    %10 = arith.mulf %3, %9 : vector<8x128xf32>
    %c0_7 = arith.constant 0 : index
    %c0_8 = arith.constant 0 : index
    %11 = vector.load %arg3[%c0_7, %c0_8] : memref<128x256xf32, #tpu.memory_space<vmem>>, vector<128x256xf32>
    %cst_9 = arith.constant dense<0.000000e+00> : vector<8x256xf32>
    %12 = tpu.matmul %10, %11, %cst_9 {dimension_numbers = #tpu.dot_dimension_numbers<[1], [0], [0], [1], [0, 0, 1, 1], [], []>} : vector<8x128xf32>, vector<128x256xf32>, vector<8x256xf32> -> vector<8x256xf32>
    %c0_10 = arith.constant 0 : index
    %c0_11 = arith.constant 0 : index
    %13 = vector.load %arg4[%c0_10, %c0_11] : memref<1x256xf32, #tpu.memory_space<vmem>>, vector<1x256xf32>
    %14 = vector.broadcast %13 : vector<1x256xf32> to vector<8x256xf32>
    %15 = arith.addf %12, %14 : vector<8x256xf32>
    %cst_12 = arith.constant 0.000000e+00 : f32
    %16 = vector.broadcast %cst_12 : f32 to vector<8x256xf32>
    %17 = arith.maximumf %15, %16 : vector<8x256xf32>
    %c0_13 = arith.constant 0 : index
    %c0_14 = arith.constant 0 : index
    %18 = vector.load %arg5[%c0_13, %c0_14] : memref<256x128xf32, #tpu.memory_space<vmem>>, vector<256x128xf32>
    %cst_15 = arith.constant dense<0.000000e+00> : vector<8x128xf32>
    %19 = tpu.matmul %17, %18, %cst_15 {dimension_numbers = #tpu.dot_dimension_numbers<[1], [0], [0], [1], [0, 0, 1, 1], [], []>} : vector<8x256xf32>, vector<256x128xf32>, vector<8x128xf32> -> vector<8x128xf32>
    %c0_16 = arith.constant 0 : index
    %c0_17 = arith.constant 0 : index
    %20 = vector.load %arg6[%c0_16, %c0_17] : memref<1x128xf32, #tpu.memory_space<vmem>>, vector<1x128xf32>
    %21 = vector.broadcast %20 : vector<1x128xf32> to vector<8x128xf32>
    %22 = arith.addf %19, %21 : vector<8x128xf32>
    %c0_18 = arith.constant 0 : index
    %c0_19 = arith.constant 0 : index
    %23 = vector.load %arg7[%c0_18, %c0_19] : memref<8x128xf32, #tpu.memory_space<vmem>>, vector<8x128xf32>
    tpu.vector_store %arg7[%c0_18, %c0_19], %22 {strides = array<i32>} : memref<8x128xf32, #tpu.memory_space<vmem>>, vector<8x128xf32>,
    return
  }
  func.func @transform_0(%arg0: i32) -> (i32, i32) {
    %c0_i32 = arith.constant 0 : i32
    %c0_i32_0 = arith.constant 0 : i32
    return %arg0, %c0_i32 : i32, i32
  }
  func.func @transform_1(%arg0: i32) -> (i32, i32) {
    %c0_i32 = arith.constant 0 : i32
    %c0_i32_0 = arith.constant 0 : i32
    %c0_i32_1 = arith.constant 0 : i32
    return %c0_i32, %c0_i32_0 : i32, i32
  }
  func.func @transform_2(%arg0: i32) -> (i32, i32) {
    %c0_i32 = arith.constant 0 : i32
    %c0_i32_0 = arith.constant 0 : i32
    %c0_i32_1 = arith.constant 0 : i32
    return %c0_i32, %c0_i32_0 : i32, i32
  }
  func.func @transform_3(%arg0: i32) -> (i32, i32) {
    %c0_i32 = arith.constant 0 : i32
    %c0_i32_0 = arith.constant 0 : i32
    %c0_i32_1 = arith.constant 0 : i32
    return %c0_i32, %c0_i32_0 : i32, i32
  }
  func.func @transform_4(%arg0: i32) -> (i32, i32) {
    %c0_i32 = arith.constant 0 : i32
    %c0_i32_0 = arith.constant 0 : i32
    %c0_i32_1 = arith.constant 0 : i32
    return %c0_i32, %c0_i32_0 : i32, i32
  }
  func.func @transform_5(%arg0: i32) -> (i32, i32) {
    %c0_i32 = arith.constant 0 : i32
    %c0_i32_0 = arith.constant 0 : i32
    %c0_i32_1 = arith.constant 0 : i32
    return %c0_i32, %c0_i32_0 : i32, i32
  }
  func.func @transform_6(%arg0: i32) -> (i32, i32) {
    %c0_i32 = arith.constant 0 : i32
    %c0_i32_0 = arith.constant 0 : i32
    return %arg0, %c0_i32 : i32, i32
  }
}

</mosaic_0001>

<bundles_post_ra>
// kernel: tile.13
= control target key start
LH: loop header
LB: loop body
LE: loop exit
PB: predicated region body
PF: predicated region fallthrough
CT: control target
= control target key end

     0   :  { %s22_s0 = inlined_call_operand.vmem [shape: f32[64], index: 0, kind: input, shape index: {}]   ;;  %s23_s1 = inlined_call_operand.vmem [shape: f32[4,64], index: 1, kind: output, shape index: {}]  }
   0x1   :  { %v4_v0 = vld [vmem:[%s22_s0] ss:$0 sm:$0xff] }
   0x2   :  { %5 = vst [vmem:[%s23_s1] sm:$0xf] %v4_v0 }

// kernel: tile.14
= control target key start
LH: loop header
LB: loop body
LE: loop exit
PB: predicated region body
PF: predicated region fallthrough
CT: control target
= control target key end

     0   :  { %s7_s8 = smov 3  ;;  %vm9_vm0 = vcmask 523264   ;;  %s34_s9 = smov 64   ;;  %vm16_vm1 = vcmask 1048064   ;;  %s54_s0 = inlined_call_operand.vmem [shape: f32[4,64], index: 0, kind: input, shape index: {}]   ;;  %s55_s1 = inlined_call_operand.vmem [shape: f32[1,256], index: 1, kind: output, shape index: {}]  }
   0x1   :  { %v5_v0 = vld [vmem:[%s54_s0] sm:$0xf]  ;;  %s12_s0 = smov 3 }
   0x2   :  { %6 = vst [vmem:[#allocation1] sm:$0xf] %v5_v0 }
   0x9   :  { %v13_v1 = vld [vmem:[#allocation1 + $0x1] ss:$2 sm:%s12_s0]   ;;  %v8_v2 = vld [vmem:[#allocation1] ss:$2 sm:%s7_s8]  }
   0xa   :  { %14 = vrot.lane.b32.xlu0 %v13_v1, %s34_s9  ;;  %10 = vst.msk [vmem:[#allocation0] ss:$8 sm:$0x3] %vm9_vm0, %v8_v2  }
  0x7c   :  { %v15_v3 = vpop.permute.xlu0 %14  }
  0x7d   :  { %17 = vst.msk [vmem:[#allocation0] ss:$8 sm:$0x3] %vm16_vm1, %v15_v3  }
  0x84   :  { %v22_v4 = vld [vmem:[#allocation0] sm:$0x1]  ;;  %v27_v5 = vld [vmem:[#allocation0 + $0x8] sm:$0x1] }
  0x85   :  { %25 = vst [vmem:[%s55_s1] sm:$0x1] %v22_v4  ;;  %32 = vst [vmem:[%s55_s1 + $0x1] sm:$0x1] %v27_v5 }

// kernel: tile.18
= control target key start
LH: loop header
LB: loop body
LE: loop exit
PB: predicated region body
PF: predicated region fallthrough
CT: control target
= control target key end

     0   :  { %s22_s0 = inlined_call_operand.vmem [shape: f32[32], index: 0, kind: input, shape index: {}]   ;;  %s23_s1 = inlined_call_operand.vmem [shape: f32[4,32], index: 1, kind: output, shape index: {}]  }
   0x1   :  { %v4_v0 = vld [vmem:[%s22_s0] ss:$0 sm:$0xff] }
   0x2   :  { %5 = vst [vmem:[%s23_s1] sm:$0xf] %v4_v0 }

// kernel: tile.19
= control target key start
LH: loop header
LB: loop body
LE: loop exit
PB: predicated region body
PF: predicated region fallthrough
CT: control target
= control target key end

     0   :  { %vm8_vm0 = vcmask 261120   ;;  %s40_s8 = smov 32   ;;  %s41_s9 = smov 64   ;;  %vm14_vm1 = vcmask 1048320   ;;  %vm20_vm2 = vcmask 785920   ;;  %vm26_vm3 = vcmask 523520   ;;  %s58_s0 = inlined_call_operand.vmem [shape: f32[4,32], index: 0, kind: input, shape index: {}]   ;;  %s59_s1 = inlined_call_operand.vmem [shape: f32[1,128], index: 1, kind: output, shape index: {}]  }
   0x1   :  { %v5_v0 = vld [vmem:[%s58_s0] sm:$0xf]  ;;  %s39_s0 = smov 96  }
   0x2   :  { %6 = vst [vmem:[#allocation1] sm:$0xf] %v5_v0 }
   0x9   :  { %v11_v1 = vld [vmem:[#allocation1 + $0x3] sm:$0x1]   ;;  %v23_v2 = vld [vmem:[#allocation1 + $0x1] sm:$0x1]   ;;  %v7_v3 = vld [vmem:[#allocation1] sm:$0x1]  }
   0xa   :  { %12 = vrot.lane.b32.xlu0 %v11_v1, %s39_s0  ;;  %24 = vrot.lane.b32.xlu1 %v23_v2, %s40_s8  ;;  %v17_v4 = vld [vmem:[#allocation1 + $0x2] sm:$0x1]   ;;  %9 = vst.msk [vmem:[#allocation0] sm:$0x1] %vm8_vm0, %v7_v3  }
   0xe   :  { %18 = vrot.lane.b32.xlu0 %v17_v4, %s41_s9 }
  0x7c   :  { %v13_v5 = vpop.permute.xlu0 %12   ;;  %v25_v6 = vpop.permute.xlu1 %24  }
  0x7d   :  { %15 = vst.msk [vmem:[#allocation0] sm:$0x1] %vm14_vm1, %v13_v5  }
  0x80   :  { %v19_v7 = vpop.permute.xlu0 %18  }
  0x81   :  { %21 = vst.msk [vmem:[#allocation0] sm:$0x1] %vm20_vm2, %v19_v7  }
  0x82   :  { %27 = vst.msk [vmem:[#allocation0] sm:$0x1] %vm26_vm3, %v25_v6  }
  0x89   :  { %v32_v8 = vld [vmem:[#allocation0] sm:$0x1] }
  0x8a   :  { %35 = vst [vmem:[%s59_s1] sm:$0x1] %v32_v8 }

// kernel: adapter_forward.1
= control target key start
LH: loop header
LB: loop body
LE: loop exit
PB: predicated region body
PF: predicated region fallthrough
CT: control target
= control target key end

     0   :  { %v559_v0 = vmov 0.0   ;;  %vm560_vm0 = vmmov 0   ;;  %s890_s1 = inlined_call_operand.vmem [shape: f32[128,128], index: 1, kind: input, shape index: {}]   ;;  %s891_s0 = inlined_call_operand.vmem [shape: f32[8,128], index: 0, kind: input, shape index: {}]   ;;  %s892_s2 = inlined_call_operand.vmem [shape: f32[128,256], index: 2, kind: input, shape index: {}]   ;;  %s893_s4 = inlined_call_operand.vmem [shape: f32[256,128], index: 4, kind: input, shape index: {}]   ;;  %s894_s3 = inlined_call_operand.vmem [shape: f32[1,256], index: 3, kind: input, shape index: {}]   ;;  %s895_s5 = inlined_call_operand.vmem [shape: f32[1,128], index: 5, kind: input, shape index: {}]   ;;  %s896_s6 = inlined_call_operand.vmem [shape: f32[8,128], index: 6, kind: output, shape index: {}]  }
   0x1   :  { %485 = vmatprep.subr.mxu0 %v559_v0  ;;  %v39_v1 = vld [vmem:[%s890_s1 + $0x78] sm:$0xff]  ;;  %v38_v2 = vld [vmem:[%s890_s1 + $0x70] sm:$0xff]  ;;  %517 = vmatprep.mubr.msk.f32.mxu0 %vm560_vm0, %v559_v0  ;;  %v37_v3 = vld [vmem:[%s890_s1 + $0x68] sm:$0xff] }
   0x2   :  { %486 = vmatpush3.msra.mxu0 %v39_v1  ;;  %520 = vmatprep.subr.mxu1 %v559_v0  ;;  %v36_v4 = vld [vmem:[%s890_s1 + $0x60] sm:$0xff]  ;;  %v35_v5 = vld [vmem:[%s890_s1 + $0x58] sm:$0xff]  ;;  %v34_v6 = vld [vmem:[%s890_s1 + $0x50] sm:$0xff] }
   0x3   :  { %487 = vmatprep.subr.mxu0 %v559_v0  ;;  %521 = vmatpush3.msra.mxu1 %v39_v1  ;;  %v33_v7 = vld [vmem:[%s890_s1 + $0x48] sm:$0xff]  ;;  %v32_v8 = vld [vmem:[%s890_s1 + $0x40] sm:$0xff]  ;;  %v31_v9 = vld [vmem:[%s890_s1 + $0x38] sm:$0xff] }
   0x4   :  { %488 = vmatpush3.msra.mxu0 %v38_v2  ;;  %522 = vmatprep.subr.mxu1 %v559_v0  ;;  %v30_v10 = vld [vmem:[%s890_s1 + $0x30] sm:$0xff]  ;;  %v29_v11 = vld [vmem:[%s890_s1 + $0x28] sm:$0xff]  ;;  %v28_v12 = vld [vmem:[%s890_s1 + $0x20] sm:$0xff] }
   0x5   :  { %489 = vmatprep.subr.mxu0 %v559_v0  ;;  %523 = vmatpush3.msra.mxu1 %v38_v2  ;;  %v27_v13 = vld [vmem:[%s890_s1 + $0x18] sm:$0xff]  ;;  %v26_v14 = vld [vmem:[%s890_s1 + $0x10] sm:$0xff]  ;;  %v25_v15 = vld [vmem:[%s890_s1 + $0x8] sm:$0xff] }
   0x6   :  { %490 = vmatpush3.msra.mxu0 %v37_v3  ;;  %524 = vmatprep.subr.mxu1 %v559_v0  ;;  %v24_v16 = vld [vmem:[%s890_s1] sm:$0xff]  ;;  %v215_v18 = vld [vmem:[%s892_s2 + $0xf8] sm:$0xff]  ;;  %v214_v19 = vld [vmem:[%s892_s2 + $0xf0] sm:$0xff] }
   0x7   :  { %491 = vmatprep.subr.mxu0 %v559_v0  ;;  %525 = vmatpush3.msra.mxu1 %v37_v3  ;;  %v23_v17 = vld [vmem:[%s891_s0] sm:$0xff]  ;;  %v213_v20 = vld [vmem:[%s892_s2 + $0xe8] sm:$0xff]  ;;  %v211_v22 = vld [vmem:[%s892_s2 + $0xd8] sm:$0xff] }
   0x8   :  { %492 = vmatpush3.msra.mxu0 %v36_v4  ;;  %526 = vmatprep.subr.mxu1 %v559_v0  ;;  %v212_v21 = vld [vmem:[%s892_s2 + $0xe0] sm:$0xff]  ;;  %v210_v23 = vld [vmem:[%s892_s2 + $0xd0] sm:$0xff]  ;;  %v209_v24 = vld [vmem:[%s892_s2 + $0xc8] sm:$0xff] }
   0x9   :  { %493 = vmatprep.subr.mxu0 %v559_v0  ;;  %527 = vmatpush3.msra.mxu1 %v36_v4  ;;  %v208_v25 = vld [vmem:[%s892_s2 + $0xc0] sm:$0xff]  ;;  %v207_v26 = vld [vmem:[%s892_s2 + $0xb8] sm:$0xff]  ;;  %v206_v27 = vld [vmem:[%s892_s2 + $0xb0] sm:$0xff] }
   0xa   :  { %494 = vmatpush3.msra.mxu0 %v35_v5  ;;  %528 = vmatprep.subr.mxu1 %v559_v0  ;;  %v205_v28 = vld [vmem:[%s892_s2 + $0xa8] sm:$0xff]  ;;  %v204_v29 = vld [vmem:[%s892_s2 + $0xa0] sm:$0xff]  ;;  %v203_v30 = vld [vmem:[%s892_s2 + $0x98] sm:$0xff] }
   0xb   :  { %495 = vmatprep.subr.mxu0 %v559_v0  ;;  %529 = vmatpush3.msra.mxu1 %v35_v5  ;;  %v202_v35 = vld [vmem:[%s892_s2 + $0x90] sm:$0xff]  ;;  %v201_v36 = vld [vmem:[%s892_s2 + $0x88] sm:$0xff]  ;;  %v200_v37 = vld [vmem:[%s892_s2 + $0x80] sm:$0xff] }
   0xc   :  { %496 = vmatpush3.msra.mxu0 %v34_v6  ;;  %530 = vmatprep.subr.mxu1 %v559_v0  ;;  %v199_v38 = vld [vmem:[%s892_s2 + $0x78] sm:$0xff]  ;;  %v198_v39 = vld [vmem:[%s892_s2 + $0x70] sm:$0xff]  ;;  %v197_v40 = vld [vmem:[%s892_s2 + $0x68] sm:$0xff] }
   0xd   :  { %497 = vmatprep.subr.mxu0 %v559_v0  ;;  %531 = vmatpush3.msra.mxu1 %v34_v6  ;;  %v196_v41 = vld [vmem:[%s892_s2 + $0x60] sm:$0xff]  ;;  %v195_v42 = vld [vmem:[%s892_s2 + $0x58] sm:$0xff]  ;;  %v194_v43 = vld [vmem:[%s892_s2 + $0x50] sm:$0xff] }
   0xe   :  { %498 = vmatpush3.msra.mxu0 %v33_v7  ;;  %532 = vmatprep.subr.mxu1 %v559_v0  ;;  %v193_v44 = vld [vmem:[%s892_s2 + $0x48] sm:$0xff]  ;;  %v192_v45 = vld [vmem:[%s892_s2 + $0x40] sm:$0xff]  ;;  %v191_v46 = vld [vmem:[%s892_s2 + $0x38] sm:$0xff] }
   0xf   :  { %499 = vmatprep.subr.mxu0 %v559_v0  ;;  %533 = vmatpush3.msra.mxu1 %v33_v7  ;;  %v190_v47 = vld [vmem:[%s892_s2 + $0x30] sm:$0xff]  ;;  %v189_v48 = vld [vmem:[%s892_s2 + $0x28] sm:$0xff]  ;;  %v188_v49 = vld [vmem:[%s892_s2 + $0x20] sm:$0xff] }
  0x10   :  { %500 = vmatpush3.msra.mxu0 %v32_v8  ;;  %534 = vmatprep.subr.mxu1 %v559_v0  ;;  %v187_v50 = vld [vmem:[%s892_s2 + $0x18] sm:$0xff]  ;;  %v186_v51 = vld [vmem:[%s892_s2 + $0x10] sm:$0xff]  ;;  %v185_v52 = vld [vmem:[%s892_s2 + $0x8] sm:$0xff] }
  0x11   :  { %501 = vmatprep.subr.mxu0 %v559_v0  ;;  %535 = vmatpush3.msra.mxu1 %v32_v8  ;;  %v184_v53 = vld [vmem:[%s892_s2] sm:$0xff]  ;;  %v332_v54 = vld [vmem:[%s893_s4 + $0xf8] sm:$0xff]  ;;  %v331_v56 = vld [vmem:[%s893_s4 + $0xf0] sm:$0xff] }
  0x12   :  { %502 = vmatpush3.msra.mxu0 %v31_v9  ;;  %536 = vmatprep.subr.mxu1 %v559_v0  ;;  %v316_v55 = vld [vmem:[%s893_s4 + $0x78] sm:$0xff]  ;;  %v315_v57 = vld [vmem:[%s893_s4 + $0x70] sm:$0xff]  ;;  %v330_v58 = vld [vmem:[%s893_s4 + $0xe8] sm:$0xff] }
  0x13   :  { %503 = vmatprep.subr.mxu0 %v559_v0  ;;  %537 = vmatpush3.msra.mxu1 %v31_v9  ;;  %v314_v59 = vld [vmem:[%s893_s4 + $0x68] sm:$0xff]  ;;  %v329_v60 = vld [vmem:[%s893_s4 + $0xe0] sm:$0xff]  ;;  %v328_v62 = vld [vmem:[%s893_s4 + $0xd8] sm:$0xff] }
  0x14   :  { %504 = vmatpush3.msra.mxu0 %v30_v10  ;;  %538 = vmatprep.subr.mxu1 %v559_v0  ;;  %v313_v61 = vld [vmem:[%s893_s4 + $0x60] sm:$0xff]  ;;  %v312_v63 = vld [vmem:[%s893_s4 + $0x58] sm:$0xff]  ;;  %v311_v1 = vld [vmem:[%s893_s4 + $0x50] sm:$0xff] }
  0x15   :  { %505 = vmatprep.subr.mxu0 %v559_v0  ;;  %539 = vmatpush3.msra.mxu1 %v30_v10  ;;  %v326_v2 = vld [vmem:[%s893_s4 + $0xc8] sm:$0xff]  ;;  %v325_v4 = vld [vmem:[%s893_s4 + $0xc0] sm:$0xff]  ;;  %v324_v6 = vld [vmem:[%s893_s4 + $0xb8] sm:$0xff] }
  0x16   :  { %506 = vmatpush3.msra.mxu0 %v29_v11  ;;  %540 = vmatprep.subr.mxu1 %v559_v0  ;;  %v310_v3 = vld [vmem:[%s893_s4 + $0x48] sm:$0xff]  ;;  %v309_v5 = vld [vmem:[%s893_s4 + $0x40] sm:$0xff]  ;;  %v308_v7 = vld [vmem:[%s893_s4 + $0x38] sm:$0xff] }
  0x17   :  { %507 = vmatprep.subr.mxu0 %v559_v0  ;;  %541 = vmatpush3.msra.mxu1 %v29_v11  ;;  %v323_v8 = vld [vmem:[%s893_s4 + $0xb0] sm:$0xff]  ;;  %v322_v10 = vld [vmem:[%s893_s4 + $0xa8] sm:$0xff] }
  0x18   :  { %508 = vmatpush3.msra.mxu0 %v28_v12  ;;  %542 = vmatprep.subr.mxu1 %v559_v0  ;;  %v307_v9 = vld [vmem:[%s893_s4 + $0x30] sm:$0xff]  ;;  %v306_v11 = vld [vmem:[%s893_s4 + $0x28] sm:$0xff] }
  0x19   :  { %509 = vmatprep.subr.mxu0 %v559_v0  ;;  %543 = vmatpush3.msra.mxu1 %v28_v12  ;;  %v321_v12 = vld [vmem:[%s893_s4 + $0xa0] sm:$0xff] }
  0x1a   :  { %510 = vmatpush3.msra.mxu0 %v27_v13  ;;  %544 = vmatprep.subr.mxu1 %v559_v0 }
  0x1b   :  { %511 = vmatprep.subr.mxu0 %v559_v0  ;;  %545 = vmatpush3.msra.mxu1 %v27_v13  ;;  %v305_v13 = vld [vmem:[%s893_s4 + $0x20] sm:$0xff] }
  0x1c   :  { %512 = vmatpush3.msra.mxu0 %v26_v14  ;;  %546 = vmatprep.subr.mxu1 %v559_v0 }
  0x1d   :  { %513 = vmatprep.subr.mxu0 %v559_v0  ;;  %547 = vmatpush3.msra.mxu1 %v26_v14 }
  0x1e   :  { %514 = vmatpush3.msra.mxu0 %v25_v15  ;;  %548 = vmatprep.subr.mxu1 %v559_v0 }
  0x1f   :  { %515 = vmatprep.subr.mxu0 %v559_v0  ;;  %549 = vmatpush3.msra.mxu1 %v25_v15 }
  0x20   :  { %516 = vmatpush3.msra.mxu0 %v24_v16  ;;  %550 = vmatprep.subr.mxu1 %v559_v0 }
  0x21   :  { %518 = vmatmul.mubr.f32.vlgmr.msra.gmra.mxu0 %v23_v17  ;;  %551 = vmatpush3.msra.mxu1 %v24_v16 }
  0x22   :  { %552 = vmatprep.mubr.msk.f32.mxu1 %vm560_vm0, %v559_v0  ;;  %292 = vmatprep.mubr.f32.mxu0 %v559_v0  ;;  %v327_v0 = vld [vmem:[%s893_s4 + $0xd0] sm:$0xff] }
  0x23   :  { %228 = vmatprep.subr.mxu0 %v215_v18  ;;  %450 = vmatprep.subr.mxu1 %v332_v54 }
  0x24   :  { %229 = vmatpush1.msra.mxu0 %v214_v19  ;;  %v320_v19 = vld [vmem:[%s893_s4 + $0x98] sm:$0xff] }
  0x25   :  { %230 = vmatprep.subr.mxu0 %v213_v20  ;;  %v304_v20 = vld [vmem:[%s893_s4 + $0x18] sm:$0xff] }
  0x26   :  { %231 = vmatpush1.msra.mxu0 %v212_v21  ;;  %v319_v21 = vld [vmem:[%s893_s4 + $0x90] sm:$0xff] }
  0x27   :  { %232 = vmatprep.subr.mxu0 %v211_v22  ;;  %v303_v22 = vld [vmem:[%s893_s4 + $0x10] sm:$0xff] }
  0x28   :  { %233 = vmatpush1.msra.mxu0 %v210_v23  ;;  %v318_v23 = vld [vmem:[%s893_s4 + $0x88] sm:$0xff] }
  0x29   :  { %234 = vmatprep.subr.mxu0 %v209_v24  ;;  %v302_v24 = vld [vmem:[%s893_s4 + $0x8] sm:$0xff] }
  0x2a   :  { %235 = vmatpush1.msra.mxu0 %v208_v25  ;;  %v317_v25 = vld [vmem:[%s893_s4 + $0x80] sm:$0xff] }
  0x2b   :  { %236 = vmatprep.subr.mxu0 %v207_v26  ;;  %v301_v26 = vld [vmem:[%s893_s4] sm:$0xff] }
  0x2c   :  { %237 = vmatpush1.msra.mxu0 %v206_v27  ;;  %v218_v27 = vlaneseq }
  0x2d   :  { %238 = vmatprep.subr.mxu0 %v205_v28 }
  0x2e   :  { %239 = vmatpush1.msra.mxu0 %v204_v29  ;;  %v219_v28 = vshrl.u32 %v218_v27, 7 }
  0x2f   :  { %240 = vmatprep.subr.mxu0 %v203_v30  ;;  %v216_v30 = vld [vmem:[%s894_s3] sm:$0x3] }
  0x30   :  { %241 = vmatpush1.msra.mxu0 %v202_v35  ;;  %v220_v29 = vsub.s32 0, %v219_v28 }
  0x31   :  { %242 = vmatprep.subr.mxu0 %v201_v36 }
  0x32   :  { %243 = vmatpush1.msra.mxu0 %v200_v37 }
  0x33   :  { %244 = vmatprep.subr.mxu0 %v199_v38 }
  0x34   :  { %245 = vmatpush1.msra.mxu0 %v198_v39 }
  0x35   :  { %246 = vmatprep.subr.mxu0 %v197_v40 }
  0x36   :  { %247 = vmatpush1.msra.mxu0 %v196_v41  ;;  %v415_v41 = vld [vmem:[%s895_s5] ss:$0 sm:$0xff] }
  0x37   :  { %248 = vmatprep.subr.mxu0 %v195_v42 }
  0x38   :  { %249 = vmatpush1.msra.mxu0 %v194_v43 }
  0x39   :  { %250 = vmatprep.subr.mxu0 %v193_v44 }
  0x3a   :  { %251 = vmatpush1.msra.mxu0 %v192_v45 }
  0x3b   :  { %252 = vmatprep.subr.mxu0 %v191_v46 }
  0x3c   :  { %253 = vmatpush1.msra.mxu0 %v190_v47 }
  0x3d   :  { %254 = vmatprep.subr.mxu0 %v189_v48 }
  0x3e   :  { %255 = vmatpush1.msra.mxu0 %v188_v49 }
  0x3f   :  { %256 = vmatprep.subr.mxu0 %v187_v50 }
  0x40   :  { %257 = vmatpush1.msra.mxu0 %v186_v51 }
  0x41   :  { %258 = vmatprep.subr.mxu0 %v185_v52 }
  0x42   :  { %259 = vmatpush1.msra.mxu0 %v184_v53 }
  0xe1   :  { %v106_v31 = vpop.f32.mrf.mxu0 }
  0xe2   :  { %v723_v32 = vsub.f32 %v23_v17, %v106_v31  ;;  %v224_v31 = vsub.s32 1, %v219_v28 }
  0xe3   :  { %v519_v33 = vpop.f32.mrf.mxu0 }
  0xe4   :  { %v111_v34 = vmul.f32 %v723_v32, %v723_v32  ;;  %v225_v33 = vrot.slane %v216_v30, %v224_v31 }
  0xe6   :  { %553 = vmatmul.mubr.f32.vlgmr.msra.gmra.mxu1 %v111_v34 }
  0xe7   :  { %451 = vmatpush3.msra.mxu1 %v316_v55 }
  0xe8   :  { %452 = vmatprep.subr.mxu1 %v331_v56 }
  0xe9   :  { %453 = vmatpush3.msra.mxu1 %v315_v57 }
  0xea   :  { %454 = vmatprep.subr.mxu1 %v330_v58 }
  0xeb   :  { %455 = vmatpush3.msra.mxu1 %v314_v59 }
  0xec   :  { %456 = vmatprep.subr.mxu1 %v329_v60 }
  0xed   :  { %457 = vmatpush3.msra.mxu1 %v313_v61 }
  0xee   :  { %458 = vmatprep.subr.mxu1 %v328_v62 }
  0xef   :  { %459 = vmatpush3.msra.mxu1 %v312_v63 }
  0xf0   :  { %460 = vmatprep.subr.mxu1 %v327_v0 }
  0xf1   :  { %461 = vmatpush3.msra.mxu1 %v311_v1 }
  0xf2   :  { %462 = vmatprep.subr.mxu1 %v326_v2 }
  0xf3   :  { %463 = vmatpush3.msra.mxu1 %v310_v3 }
  0xf4   :  { %464 = vmatprep.subr.mxu1 %v325_v4 }
  0xf5   :  { %465 = vmatpush3.msra.mxu1 %v309_v5 }
  0xf6   :  { %466 = vmatprep.subr.mxu1 %v324_v6 }
  0xf7   :  { %467 = vmatpush3.msra.mxu1 %v308_v7 }
  0xf8   :  { %468 = vmatprep.subr.mxu1 %v323_v8 }
  0xf9   :  { %469 = vmatpush3.msra.mxu1 %v307_v9 }
  0xfa   :  { %470 = vmatprep.subr.mxu1 %v322_v10 }
  0xfb   :  { %471 = vmatpush3.msra.mxu1 %v306_v11 }
  0xfc   :  { %472 = vmatprep.subr.mxu1 %v321_v12 }
  0xfd   :  { %473 = vmatpush3.msra.mxu1 %v305_v13 }
  0xfe   :  { %474 = vmatprep.subr.mxu1 %v320_v19 }
  0xff   :  { %475 = vmatpush3.msra.mxu1 %v304_v20 }
 0x100   :  { %476 = vmatprep.subr.mxu1 %v319_v21 }
 0x101   :  { %477 = vmatpush3.msra.mxu1 %v303_v22 }
 0x102   :  { %478 = vmatprep.subr.mxu1 %v318_v23 }
 0x103   :  { %479 = vmatpush3.msra.mxu1 %v302_v24 }
 0x104   :  { %480 = vmatprep.subr.mxu1 %v317_v25 }
 0x105   :  { %481 = vmatpush3.msra.mxu1 %v301_v26 }
 0x1a6   :  { %v178_v14 = vpop.f32.mrf.mxu1 }
 0x1a7   :  { %v179_v15 = vadd.f32 1e-05, %v178_v14 }
 0x1a8   :  { %v554_v16 = vpop.f32.mrf.mxu1 }
 0x1a9   :  { %557 = vrsqrt.f32 %v179_v15 }
 0x1b6   :  { %v558_v17 = vpop.eup %557 }
 0x1b7   :  { %v183_v18 = vmul.f32 %v558_v17, %v723_v32  ;;  %v221_v32 = vrot.slane %v216_v30, %v220_v29 }
 0x1b9   :  { %293 = vmatmul.mubr.f32.vlgmr.msra.gmra.mxu0 %v183_v18 }
 0x279   :  { %v294_v34 = vpop.f32.mrf.mxu0 }
 0x27a   :  { %v295_v35 = vadd.f32 %v294_v34, %v221_v32 }
 0x27b   :  { %v296_v36 = vpop.f32.mrf.mxu0 }
 0x27c   :  { %v297_v37 = vadd.f32 %v296_v36, %v225_v33  ;;  %v299_v39 = vmax.f32 %v295_v35, 0.0 }
 0x27e   :  { %v300_v38 = vmax.f32 %v297_v37, 0.0 }
 0x280   :  { %404 = vmatprep.mubr.f32.mxu1 %v300_v38 }
 0x281   :  { %405 = vmatmul.mubr.f32.vlgmr.msra.gmra.mxu1 %v299_v39 }
 0x341   :  { %v482_v40 = vpop.f32.mrf.mxu1 }
 0x343   :  { %v483_v42 = vpop.f32.mrf.mxu1 }
 0x344   :  { %v484_v43 = vadd.f32 %v483_v42, %v482_v40 }
 0x346   :  { %v407_v44 = vadd.f32 %v484_v43, %v415_v41 }
 0x348   :  { %410 = vst [vmem:[%s896_s6] sm:$0xff] %v407_v44 }

</bundles_post_ra>
